<compile_context>
chip_gen: v6e
topology: v6e:2x2x1
jax: 0.10.0
libtpu: 0.0.40
codegen_flags: <defaults>
</compile_context>

<pallas_src>
import jax
import jax.numpy as jnp
from jax.experimental import pallas as pl
from jax.experimental.pallas import tpu as pltpu

BN_EPS = 1e-5
NORM_EPS = 1e-12


def projection_head_kernel(x_ref, w1_ref, b1_ref, w2_ref, b2_ref, o_ref):
    # x_ref: (1, Cin, TS) tile, channels on sublanes, voxels on lanes.
    # Cast (no-op for the f32 path; VPU cast for bf16) so the MXU sees the
    # compute dtype regardless of how x arrived from HBM.
    x = x_ref[0].astype(w1_ref.dtype)                        # (Cin, TS)

    # Conv1 (1x1x1) with eval-BN folded in:  h = (scale*W1) @ x + b1_fold
    h = jnp.dot(w1_ref[...], x, preferred_element_type=jnp.float32)
    h = h + b1_ref[...]                                      # (Cin,1) bcast over lanes
    h = jnp.maximum(h, 0.0)                                  # ReLU (f32)

    # Conv2 (1x1x1):  y = W2 @ h + b2
    y = jnp.dot(w2_ref[...], h.astype(w2_ref.dtype),
                preferred_element_type=jnp.float32)
    y = y + b2_ref[...]                                      # (Cproj, TS)

    # F.normalize(p=2, dim=channel):  y / max(||y||, eps)
    #   == y * rsqrt(max(sum(y^2), eps^2))  (rsqrt -> EUP, reduce -> XLU)
    sumsq = jnp.sum(y * y, axis=0, keepdims=True)            # (1, TS)
    inv = jax.lax.rsqrt(jnp.maximum(sumsq, NORM_EPS * NORM_EPS))
    o_ref[0] = (y * inv).astype(o_ref.dtype)


def _pick_tile_s(s_total, c_in, c_proj, x_itemsize, *, budget_bytes=24 << 20):
    """Largest lane-dense tile (multiple of 128) fitting a VMEM tile budget."""
    per_lane = 2 * (c_in * x_itemsize) + 2 * (c_proj * 4)    # dbl-buffered in+out
    tile_s = max(128, (budget_bytes // max(per_lane, 1)) // 128 * 128)
    tile_s = min(tile_s, 2048)                               # diminishing returns
    tile_s = min(tile_s, pl.cdiv(s_total, 128) * 128)        # don't exceed data
    return int(tile_s)


def projection_head_forward(x_ncdhw, params, *, compute_dtype=jnp.bfloat16):
    """x_ncdhw: (N, Cin, D, H, W) float32.  Returns (N, Cproj, D, H, W) f32."""
    n, c_in, d, h, w = x_ncdhw.shape
    c_proj = params["w2"].shape[0]
    s_total = d * h * w

    # ---- host-side prep: fold eval-mode BN into conv1 ----------------------
    scale = params["gamma"] * jax.lax.rsqrt(params["running_var"] + BN_EPS)
    w1_fold = params["w1"] * scale[:, None]                           # (Cin, Cin)
    b1_fold = scale * (params["b1"] - params["running_mean"]) + params["beta"]

    # ---- channel-major layout: NCDHW is already (N, C, S) ------------------
    x_flat = x_ncdhw.reshape(n, c_in, s_total)

    # lane-dense spatial tiling
    x_itemsize = jnp.dtype(compute_dtype).itemsize
    tile_s = _pick_tile_s(s_total, c_in, c_proj, x_itemsize)
    s_pad = pl.cdiv(s_total, tile_s) * tile_s
    if s_pad != s_total:
        # Padding forces a copy anyway -> fuse the compute-dtype cast into it
        # so the kernel streams the narrower dtype from HBM.
        x_flat = jnp.pad(x_flat, ((0, 0), (0, 0), (0, s_pad - s_total)))
        x_flat = x_flat.astype(compute_dtype)
    # else: stream x as-is (f32) and cast inside the kernel — one HBM pass.

    # matmul weights in compute dtype; biases stay f32 (added post-accumulate)
    w1m = w1_fold.astype(compute_dtype)                               # (Cin, Cin)
    w2m = params["w2"].astype(compute_dtype)                          # (Cproj, Cin)
    b1c = b1_fold.reshape(c_in, 1).astype(jnp.float32)
    b2c = params["b2"].reshape(c_proj, 1).astype(jnp.float32)

    # ---- VMEM budget (double-buffered x and out tiles + resident weights) --
    x_in_item = jnp.dtype(x_flat.dtype).itemsize
    w_item = jnp.dtype(compute_dtype).itemsize
    tile_bytes = 2 * (c_in * tile_s * x_in_item) + 2 * (c_proj * tile_s * 4)
    weight_bytes = 2 * ((c_in * c_in + c_proj * c_in) * w_item
                        + (c_in + c_proj) * 4)
    vmem_needed = tile_bytes + weight_bytes
    vmem_limit = int(min(max(2 * vmem_needed, 32 * 1024 * 1024),
                         48 * 1024 * 1024))   # stay well under v7x's 64 MiB

    grid = (n, s_pad // tile_s)
    full2d = lambda shp: pl.BlockSpec(shp, lambda b, s: (0, 0))

    out_flat = pl.pallas_call(
        projection_head_kernel,
        out_shape=jax.ShapeDtypeStruct((n, c_proj, s_pad), jnp.float32),
        grid_spec=pl.GridSpec(
            grid=grid,
            in_specs=[
                pl.BlockSpec((1, c_in, tile_s), lambda b, s: (b, 0, s)),  # x
                full2d((c_in, c_in)),                                     # W1 folded
                full2d((c_in, 1)),                                        # b1 folded
                full2d((c_proj, c_in)),                                   # W2
                full2d((c_proj, 1)),                                      # b2
            ],
            out_specs=pl.BlockSpec((1, c_proj, tile_s), lambda b, s: (b, 0, s)),
        ),
        compiler_params=pltpu.CompilerParams(
            dimension_semantics=("parallel", "parallel"),
            vmem_limit_bytes=vmem_limit),
    )(x_flat, w1m, b1c, w2m, b2c)

    out = out_flat[:, :, :s_total].reshape(n, c_proj, d, h, w)  # already NCDHW
    return out


def init_params(key, dim_in, proj_dim):
    k1, k2, k3, k4, k5, k6 = jax.random.split(key, 6)
    # Conv3d kernel_size=1 weights: (Cout, Cin) after squeezing the 1x1x1 taps.
    bound1 = 1.0 / jnp.sqrt(dim_in)
    w1 = jax.random.uniform(k1, (dim_in, dim_in), jnp.float32, -bound1, bound1)
    b1 = jax.random.uniform(k2, (dim_in,), jnp.float32, -bound1, bound1)
    w2 = jax.random.uniform(k3, (proj_dim, dim_in), jnp.float32, -bound1, bound1)
    b2 = jax.random.uniform(k4, (proj_dim,), jnp.float32, -bound1, bound1)
    # BatchNorm3d params; perturb slightly so the affine/stats actually matter.
    gamma = 1.0 + 0.1 * jax.random.normal(k5, (dim_in,), jnp.float32)
    beta = 0.1 * jax.random.normal(k6, (dim_in,), jnp.float32)
    running_mean = 0.05 * jax.random.normal(k1, (dim_in,), jnp.float32)
    running_var = 1.0 + 0.1 * jax.random.uniform(k2, (dim_in,), jnp.float32)
    return dict(w1=w1, b1=b1, gamma=gamma, beta=beta,
                running_mean=running_mean, running_var=running_var,
                w2=w2, b2=b2)


def reference_forward(x_ncdhw, p):
    """Pure-JAX reference mirroring the PyTorch forward (BN in eval mode)."""
    n, c, d, h, w = x_ncdhw.shape
    xf = jnp.transpose(x_ncdhw, (0, 2, 3, 4, 1)).reshape(-1, c)
    y = xf @ p["w1"].T + p["b1"]
    y = (y - p["running_mean"]) / jnp.sqrt(p["running_var"] + BN_EPS)
    y = y * p["gamma"] + p["beta"]
    y = jnp.maximum(y, 0.0)
    y = y @ p["w2"].T + p["b2"]
    norm = jnp.sqrt(jnp.sum(y * y, axis=-1, keepdims=True))
    y = y / jnp.maximum(norm, NORM_EPS)
    y = y.reshape(n, d, h, w, -1)
    return jnp.transpose(y, (0, 4, 1, 2, 3))


if __name__ == "__main__":
    key = jax.random.PRNGKey(0)
    k_x, k_p = jax.random.split(key)

    N, DIM_IN, D, H, W = 2, 16, 4, 4, 4
    PROJ_DIM = 32

    x = jax.random.normal(k_x, (N, DIM_IN, D, H, W), jnp.float32)
    params = init_params(k_p, DIM_IN, PROJ_DIM)
    ref = reference_forward(x, params)

    # Strict check: pure-f32 compute path.
    out_f32 = jax.block_until_ready(
        projection_head_forward(x, params, compute_dtype=jnp.float32))
    assert out_f32.shape == (N, PROJ_DIM, D, H, W), out_f32.shape
    assert jnp.allclose(out_f32, ref, atol=1e-5, rtol=1e-5), \
        float(jnp.max(jnp.abs(out_f32 - ref)))

    # Default (bf16 matmul inputs, f32 accumulation/elementwise): looser tol.
    out_bf16 = jax.block_until_ready(projection_head_forward(x, params))
    assert out_bf16.shape == (N, PROJ_DIM, D, H, W), out_bf16.shape
    assert jnp.allclose(out_bf16, ref, atol=5e-2, rtol=5e-2), \
        float(jnp.max(jnp.abs(out_bf16 - ref)))
    # outputs should be (near-)unit-norm along the channel axis
    norms = jnp.sqrt(jnp.sum(out_bf16 * out_bf16, axis=1))
    assert jnp.allclose(norms, 1.0, atol=1e-2), float(jnp.max(jnp.abs(norms - 1)))

    print("KERNEL_OK")
</pallas_src>

<mosaic_0001>
module attributes {stable_mosaic.version = 11 : i64} {
  func.func @projection_head_kernel(%arg0: i32, %arg1: i32, %arg2: memref<1x16x128xf32, #tpu.memory_space<vmem>>, %arg3: memref<16x16xf32, #tpu.memory_space<vmem>>, %arg4: memref<16x1xf32, #tpu.memory_space<vmem>>, %arg5: memref<32x16xf32, #tpu.memory_space<vmem>>, %arg6: memref<32x1xf32, #tpu.memory_space<vmem>>, %arg7: memref<1x32x128xf32, #tpu.memory_space<vmem>>) attributes {dimension_semantics = [#tpu.dimension_semantics<parallel>, #tpu.dimension_semantics<parallel>], iteration_bounds = array<i64: 2, 1>, scalar_prefetch = 0 : i64, scratch_operands = 0 : i64, tpu.core_type = #tpu.core_type<tc>, window_params = [{transform_indices = @transform_0, window_bounds = array<i64: 1, 16, 128>}, {pipeline_mode = #tpu.pipeline_mode<synchronous>, transform_indices = @transform_1, window_bounds = array<i64: 16, 16>}, {pipeline_mode = #tpu.pipeline_mode<synchronous>, transform_indices = @transform_2, window_bounds = array<i64: 16, 1>}, {pipeline_mode = #tpu.pipeline_mode<synchronous>, transform_indices = @transform_3, window_bounds = array<i64: 32, 16>}, {pipeline_mode = #tpu.pipeline_mode<synchronous>, transform_indices = @transform_4, window_bounds = array<i64: 32, 1>}, {transform_indices = @transform_5, window_bounds = array<i64: 1, 32, 128>}]} {
    %c0 = arith.constant 0 : index
    %c0_0 = arith.constant 0 : index
    %c0_1 = arith.constant 0 : index
    %0 = vector.load %arg2[%c0, %c0_0, %c0_1] : memref<1x16x128xf32, #tpu.memory_space<vmem>>, vector<1x16x128xf32>
    %1 = vector.shape_cast %0 : vector<1x16x128xf32> to vector<16x128xf32>
    %c0_2 = arith.constant 0 : index
    %c0_3 = arith.constant 0 : index
    %2 = vector.load %arg3[%c0_2, %c0_3] : memref<16x16xf32, #tpu.memory_space<vmem>>, vector<16x16xf32>
    %cst = arith.constant dense<0.000000e+00> : vector<16x128xf32>
    %3 = tpu.matmul %2, %1, %cst {dimension_numbers = #tpu.dot_dimension_numbers<[1], [0], [0], [1], [0, 0, 1, 1], [], []>} : vector<16x16xf32>, vector<16x128xf32>, vector<16x128xf32> -> vector<16x128xf32>
    %c0_4 = arith.constant 0 : index
    %c0_5 = arith.constant 0 : index
    %4 = vector.load %arg4[%c0_4, %c0_5] : memref<16x1xf32, #tpu.memory_space<vmem>>, vector<16x1xf32>
    %5 = vector.broadcast %4 : vector<16x1xf32> to vector<16x128xf32>
    %6 = arith.addf %3, %5 : vector<16x128xf32>
    %cst_6 = arith.constant 0.000000e+00 : f32
    %7 = vector.broadcast %cst_6 : f32 to vector<16x128xf32>
    %8 = arith.maximumf %6, %7 : vector<16x128xf32>
    %c0_7 = arith.constant 0 : index
    %c0_8 = arith.constant 0 : index
    %9 = vector.load %arg5[%c0_7, %c0_8] : memref<32x16xf32, #tpu.memory_space<vmem>>, vector<32x16xf32>
    %cst_9 = arith.constant dense<0.000000e+00> : vector<32x128xf32>
    %10 = tpu.matmul %9, %8, %cst_9 {dimension_numbers = #tpu.dot_dimension_numbers<[1], [0], [0], [1], [0, 0, 1, 1], [], []>} : vector<32x16xf32>, vector<16x128xf32>, vector<32x128xf32> -> vector<32x128xf32>
    %c0_10 = arith.constant 0 : index
    %c0_11 = arith.constant 0 : index
    %11 = vector.load %arg6[%c0_10, %c0_11] : memref<32x1xf32, #tpu.memory_space<vmem>>, vector<32x1xf32>
    %12 = vector.broadcast %11 : vector<32x1xf32> to vector<32x128xf32>
    %13 = arith.addf %10, %12 : vector<32x128xf32>
    %14 = arith.mulf %13, %13 : vector<32x128xf32>
    %cst_12 = arith.constant dense<0.000000e+00> : vector<128xf32>
    %15 = vector.multi_reduction <add>, %14, %cst_12 [0] : vector<32x128xf32> to vector<128xf32>
    %16 = vector.shape_cast %15 : vector<128xf32> to vector<1x128xf32>
    %cst_13 = arith.constant 1.000000e-24 : f32
    %17 = vector.broadcast %cst_13 : f32 to vector<1x128xf32>
    %18 = arith.maximumf %16, %17 : vector<1x128xf32>
    %19 = math.rsqrt %18 : vector<1x128xf32>
    %20 = vector.broadcast %19 : vector<1x128xf32> to vector<32x128xf32>
    %21 = arith.mulf %13, %20 : vector<32x128xf32>
    %c0_14 = arith.constant 0 : index
    %c0_15 = arith.constant 0 : index
    %c0_16 = arith.constant 0 : index
    %22 = vector.load %arg7[%c0_14, %c0_15, %c0_16] : memref<1x32x128xf32, #tpu.memory_space<vmem>>, vector<1x32x128xf32>
    %23 = vector.shape_cast %22 : vector<1x32x128xf32> to vector<32x128xf32>
    %24 = vector.shape_cast %21 : vector<32x128xf32> to vector<1x32x128xf32>
    tpu.vector_store %arg7[%c0_14, %c0_15, %c0_16], %24 {strides = array<i32>} : memref<1x32x128xf32, #tpu.memory_space<vmem>>, vector<1x32x128xf32>,
    return
  }
  func.func @transform_0(%arg0: i32, %arg1: i32) -> (i32, i32, i32) {
    %c0_i32 = arith.constant 0 : i32
    %c0_i32_0 = arith.constant 0 : i32
    return %arg0, %c0_i32, %arg1 : i32, i32, i32
  }
  func.func @transform_1(%arg0: i32, %arg1: i32) -> (i32, i32) {
    %c0_i32 = arith.constant 0 : i32
    %c0_i32_0 = arith.constant 0 : i32
    %c0_i32_1 = arith.constant 0 : i32
    return %c0_i32, %c0_i32_0 : i32, i32
  }
  func.func @transform_2(%arg0: i32, %arg1: i32) -> (i32, i32) {
    %c0_i32 = arith.constant 0 : i32
    %c0_i32_0 = arith.constant 0 : i32
    %c0_i32_1 = arith.constant 0 : i32
    return %c0_i32, %c0_i32_0 : i32, i32
  }
  func.func @transform_3(%arg0: i32, %arg1: i32) -> (i32, i32) {
    %c0_i32 = arith.constant 0 : i32
    %c0_i32_0 = arith.constant 0 : i32
    %c0_i32_1 = arith.constant 0 : i32
    return %c0_i32, %c0_i32_0 : i32, i32
  }
  func.func @transform_4(%arg0: i32, %arg1: i32) -> (i32, i32) {
    %c0_i32 = arith.constant 0 : i32
    %c0_i32_0 = arith.constant 0 : i32
    %c0_i32_1 = arith.constant 0 : i32
    return %c0_i32, %c0_i32_0 : i32, i32
  }
  func.func @transform_5(%arg0: i32, %arg1: i32) -> (i32, i32, i32) {
    %c0_i32 = arith.constant 0 : i32
    %c0_i32_0 = arith.constant 0 : i32
    return %arg0, %c0_i32, %arg1 : i32, i32, i32
  }
}

</mosaic_0001>

<bundles_post_ra>
// kernel: tpu_custom_call.1
= control target key start
LH: loop header
LB: loop body
LE: loop exit
PB: predicated region body
PF: predicated region fallthrough
CT: control target
= control target key end

     0   :  { %10 = vsyncpa [#allocation3], 0  ;;  %s967_s0 = inlined_call_operand.vmem [shape: f32[2,16,128], index: 0, kind: input, shape index: {}]   ;;  %s968_s1 = inlined_call_operand.vmem [shape: f32[16,16], index: 1, kind: input, shape index: {}]   ;;  %s969_s2 = inlined_call_operand.vmem [shape: f32[16,1], index: 2, kind: input, shape index: {}]   ;;  %s970_s3 = inlined_call_operand.vmem [shape: f32[32,16], index: 3, kind: input, shape index: {}]   ;;  %s971_s4 = inlined_call_operand.vmem [shape: f32[32,1], index: 4, kind: input, shape index: {}]   ;;  %s972_s5 = inlined_call_operand.hbm [shape: f32[2,32,128], index: 5, kind: output, shape index: {}]  }
   0x1   :  { %12 = vsyncpa [#allocation3 + $0x1], 0  ;;  %s811_s18 = smov 0   ;;  %s813_s19 = smov 0  }
   0x2   :  { %s815_s20 = smov 0   ;;  %s817_s21 = smov 0  }
   0x3   :  { %s819_s22 = smov 0   ;;  %s821_s23 = smov 0  }
   0x4 LB: > { %s589_s24 = sadd.s32 4294967295, %s775_s23   ;;  %s590_s25 = sadd.s32 4294967294, %s775_s23   ;;  %s775_s23 = sphi %s821_s23, %s18_s23   ;;  %s771_s22 = sphi %s819_s22, %s979_s22   ;;  %s767_s21 = sphi %s817_s21, %s978_s21   ;;  %s763_s20 = sphi %s815_s20, %s977_s20   ;;  %s759_s19 = sphi %s813_s19, %s976_s19   ;;  %s755_s18 = sphi %s811_s18, %s975_s18  }
   0x5   : > { %s30_s26 = sadd.s32 1, %s771_s22  ;;  %s151_s27 = sadd.s32 1, %s763_s20 }
   0x6   : > { %p32_p0 = scmp.ge.s32.totalorder %s30_s26, 2  ;;  %p161_p1 = scmp.ne.s32.totalorder %s763_s20, %s759_s19 }
   0x7   : > { %p162_p2 = scmp.eq.s32.totalorder %s589_s24, 1  ;;  %p167_p3 = scmp.ne.s32.totalorder %s759_s19, %s755_s18 }
   0x8   : > { %s981_s26 = smov (%p32_p0, %s30_s26), 0  ;;  %p168_p5 = scmp.eq.s32.totalorder %s590_s25, 1 }
   0x9   : > { %p851_p4 = por %p162_p2, %p161_p1  ;;  %s146_s29 = ssub.s32 %s771_s22, %s981_s26 }
   0xa   : > { %p593_p6 = scmp.ge.s32.totalorder %s775_s23, 1  ;;  %p149_p7 = scmp.eq.s32.totalorder %s146_s29, 0 }
   0xb   : > { %p858_p8 = por %p168_p5, %p167_p3  ;;  %p209_p9 = scmp.lt.s32.totalorder %s775_s23, 3 }
   0xc   : > { %s864_s6 = scalar_select %p149_p7, %s763_s20, %s151_s27  }
   0xd   : > { %p210_p10 = pnand %p593_p6, %p209_p9 }
   0xe   : > { %p240_p11 = scmp.lt.s32.totalorder (!%p210_p10), %s767_s21, 1  ;;  %s237_s29 = sand.u32 (!%p210_p10), 1, %s759_s19  }
   0xf   : > { %213 = sbr.rel (%p210_p10) target bundleno = 482 (0x1e2), region = 40  ;;  %s594_s7 = sshll.u32 (!%p210_p10), %s237_s29, 5 }
  0x10   : > { %s239_s8 = scalar_lea.vmem (!%p210_p10), [#allocation2], %s594_s7  ;;  %s609_s10 = sshll.u32 (!%p210_p10), %s767_s21, 9 }
  0x11   : > { %s511_s9 = sshll.u32 (!%p210_p10), %s239_s8, 4  ;;  %s920_s13 = scalar_lea.hbm (!%p210_p10), %s972_s5, %s609_s10  ;;  %s915_s9 = int_to_ptr.vmem [resolvable:$true] %s511_s9 }
  0x12   : > { %s778_s15 = smov (!%p210_p10), [#allocation2]  }
  0x13   : > { %s703_s16 = sshll.u32 (!%p210_p10), %s778_s15, 4  ;;  %s704_s16 = int_to_ptr.vmem [resolvable:$false] %s703_s16 }
  0x14   : > { %v250_v0 = vld [vmem:[%s968_s1] sm:$0xff]  ;;  %vm264_vm0 = vcmask 130048   ;;  %v253_v1 = vld [vmem:[%s969_s2 + $0x8] sm:$0xff]  ;;  %v777_v2 = vmov 0   ;;  %s241_s11 = scalar_select %p240_p11, %s767_s21, 1  ;;  %v354_v6 = vld [vmem:[%s971_s4 + $0x10] sm:$0xff] }
  0x15   : > { %624 = vmatprep.mubr.msk.f32.mxu0 %vm264_vm0, %v250_v0  ;;  %695 = vset.pattern.permute.xlu0 %v777_v2  ;;  %v252_v3 = vld [vmem:[%s969_s2] sm:$0xff]  ;;  %v251_v7 = vld [vmem:[%s968_s1 + $0x8] sm:$0xff]  ;;  %v355_v11 = vld [vmem:[%s971_s4 + $0x18] sm:$0xff]  ;;  %s922_s21 = scalar_lea.sflag [#allocation3], %s237_s29  ;;  %p706_p1 = scmp.lt.s32.totalorder %s915_s9, %s704_s16 }
  0x16   : > { %261 = vperm.xlu0 %695, %v253_v1   ;;  %696 = vset.pattern.permute.xlu1 %v777_v2  ;;  %s608_s14 = sshll.u32 %s241_s11, 4  ;;  %v348_v8 = vld [vmem:[%s970_s3] sm:$0xff]  ;;  %v353_v10 = vld [vmem:[%s971_s4 + $0x8] sm:$0xff]  ;;  %v350_v21 = vld [vmem:[%s970_s3 + $0x10] sm:$0xff] }
  0x17   : > { %s247_s17 = scalar_lea.vmem %s967_s0, %s608_s14  ;;  %631 = vmatprep.mubr.msk.f32.mxu1 %vm264_vm0, %v348_v8  ;;  %v352_v9 = vld [vmem:[%s971_s4] sm:$0xff]  ;;  %v349_v20 = vld [vmem:[%s970_s3 + $0x8] sm:$0xff]  ;;  %v351_v22 = vld [vmem:[%s970_s3 + $0x18] sm:$0xff]  ;;  %s699_s14 = scalar_lea.vmem %s915_s9, 512 }
  0x18   : > { %v249_v4 = vld [vmem:[%s247_s17 + $0x8] sm:$0xff]  ;;  %v248_v5 = vld [vmem:[%s247_s17] sm:$0xff]  ;;  %358 = vperm.xlu1 %696, %v352_v9   ;;  %p700_p12 = scmp.ne.s32.totalorder %s915_s9, %s699_s14  ;;  %s705_s17 = scalar_lea.vmem %s704_s16, 1024 }
  0x19   : > { %620 = vmatprep.subr.mxu0 %v249_v4  ;;  %p707_p2 = scmp.lt.s32.totalorder %s705_s17, %s699_s14 }
  0x1a   : > { %256 = vperm.xlu0 %695, %v252_v3   ;;  %621 = vmatpush3.msra.mxu0 %v249_v4  ;;  %p701_p13 = pnand %p700_p12, %p851_p4 }
  0x1b   : > { %622 = vmatprep.subr.mxu0 %v248_v5  ;;  %p708_p3 = por %p707_p2, %p706_p1 }
  0x1c   : > { %623 = vmatpush3.msra.mxu0 %v248_v5  ;;  %363 = vperm.xlu1 %696, %v353_v10   ;;  %p702_p0 = pneg %p701_p13 }
  0x1d   : > { %625 = vmatmul.mubr.msk.f32.vlgmr.msra.gmra.mxu0 %vm264_vm0, %v251_v7 }
  0x1e   : > { %368 = vperm.xlu0 %695, %v354_v6   ;;  %p709_p5 = pnand %p708_p3, %p702_p0 }
  0x20   : > { %373 = vperm.xlu1 %696, %v355_v11  }
  0x91   : > { %v262_v12 = vpop.permute.xlu0 %261 }
  0x93   : > { %v359_v23 = vpop.permute.xlu1 %358 }
  0x95   : > { %v257_v15 = vpop.permute.xlu0 %256 }
  0x97   : > { %v364_v24 = vpop.permute.xlu1 %363 }
  0x99   : > { %v369_v30 = vpop.permute.xlu0 %368 }
  0x9b   : > { %v374_v32 = vpop.permute.xlu1 %373 }
  0xdd   : > { %v626_v13 = vpop.f32.mrf.mxu0 }
  0xde   : > { %v343_v14 = vadd.f32 %v626_v13, %v262_v12 }
  0xdf   : > { %v337_v16 = vpop.f32.mrf.mxu0 }
  0xe0   : > { %v347_v17 = vmax.f32 %v343_v14, 0.0  ;;  %v338_v18 = vadd.f32 %v337_v16, %v257_v15 }
  0xe2   : > { %v346_v19 = vmax.f32 %v338_v18, 0.0  ;;  %627 = vmatprep.subr.mxu1 %v347_v17 }
  0xe3   : > { %628 = vmatpush3.msra.mxu1 %v347_v17 }
  0xe4   : > { %629 = vmatprep.subr.mxu1 %v346_v19 }
  0xe5   : > { %630 = vmatpush3.msra.mxu1 %v346_v19 }
  0xe6   : > { %632 = vmatmul.mubr.msk.f32.vlgmr.msra.gmra.mxu1 %vm264_vm0, %v349_v20 }
  0xe7   : > { %634 = vmatprep.mubr.msk.f32.mxu1 %vm264_vm0, %v350_v21 }
  0xea   : > { %635 = vmatmul.mubr.msk.f32.gmra.mxu1 %vm264_vm0, %v351_v22 }
 0x1a6   : > { %v633_v25 = vpop.f32.mrf.mxu1 }
 0x1a7   : > { %v460_v27 = vadd.f32 %v633_v25, %v364_v24 }
 0x1a8   : > { %v454_v26 = vpop.f32.mrf.mxu1 }
 0x1a9   : > { %v455_v28 = vadd.f32 %v454_v26, %v359_v23  ;;  %v474_v34 = vmul.f32 %v460_v27, %v460_v27 }
 0x1aa   : > { %v636_v29 = vpop.f32.mrf.mxu1 }
 0x1ab   : > { %v473_v31 = vmul.f32 %v455_v28, %v455_v28  ;;  %v470_v35 = vadd.f32 %v636_v29, %v374_v32 }
 0x1ac   : > { %v464_v33 = vpop.f32.mrf.mxu1 }
 0x1ad   : > { %v465_v36 = vadd.f32 %v464_v33, %v369_v30  ;;  %v477_v37 = vadd.f32 %v474_v34, %v473_v31  ;;  %v476_v39 = vmul.f32 %v470_v35, %v470_v35 }
 0x1af   : > { %v475_v38 = vmul.f32 %v465_v36, %v465_v36 }
 0x1b1   : > { %v478_v40 = vadd.f32 %v477_v37, %v475_v38 }
 0x1b3   : > { %v479_v41 = vadd.f32 %v478_v40, %v476_v39 }
 0x1b5   : > { %v480_v42 = vrot.slane %v479_v41, 4 }
 0x1b7   : > { %v481_v43 = vadd.f32 %v480_v42, %v479_v41 }
 0x1b9   : > { %v482_v44 = vrot.slane %v481_v43, 2 }
 0x1bb   : > { %v483_v45 = vadd.f32 %v482_v44, %v481_v43 }
 0x1bd   : > { %v484_v46 = vrot.slane %v483_v45, 1 }
 0x1bf   : > { %v485_v47 = vadd.f32 %v484_v46, %v483_v45 }
 0x1c1   : > { %v486_v48 = vmax.f32 %v485_v47, 1e-24 }
 0x1c3   : > { %697 = vrsqrt.f32 %v486_v48 }
 0x1d0   : > { %v698_v49 = vpop.eup %697 }
 0x1d1   : > { %v488_v50 = vmul.f32 %v698_v49, %v455_v28  ;;  %v489_v51 = vmul.f32 %v698_v49, %v460_v27  ;;  %v490_v52 = vmul.f32 %v698_v49, %v465_v36  ;;  %v491_v53 = vmul.f32 %v698_v49, %v470_v35 }
 0x1d3   : > { %492 = vst [vmem:[%s239_s8] sm:$0xff] %v488_v50  ;;  %493 = vst [vmem:[%s239_s8 + $0x8] sm:$0xff] %v489_v51 }
 0x1d4   : > { %494 = vst [vmem:[%s239_s8 + $0x10] sm:$0xff] %v490_v52  ;;  %495 = vst [vmem:[%s239_s8 + $0x18] sm:$0xff] %v491_v53 }
 0x1d5   : > { %712 = shalt.err (!%p709_p5)
}
 0x1d6   : > { %s713_s24 = scalar_lea.hbm %s920_s13, 512  ;;  %s717_s29 = scalar_lea.hbm %s972_s5, 1024 }
 0x1d7   : > { %p714_p6 = scmp.ne.s32.totalorder %s920_s13, %s713_s24  ;;  %p718_p10 = scmp.lt.s32.totalorder %s920_s13, %s972_s5 }
 0x1d8   : > { %p719_p11 = scmp.lt.s32.totalorder %s717_s29, %s713_s24 }
 0x1d9   : > { %p715_p7 = pnand %p714_p6, %p851_p4 }
 0x1da   : > { %p720_p12 = por %p719_p11, %p718_p10 }
 0x1db   : > { %p716_p9 = pneg %p715_p7 }
 0x1dd   : > { %p721_p13 = pnand %p720_p12, %p716_p9 }
 0x1df   : > { %724 = shalt.err (!%p721_p13)
}
 0x1e0   : > { %s779_s10 = smov 128   ;;  %s780_s11 = smov 8  }
 0x1e1   : > { %637 = dma.vmem_to_hbm [thread:$0]  (%p851_p4), %s915_s9, 512, %s920_s13, %s922_s21, %s779_s10, %s779_s10, %s780_s11  }
 0x1e2 PF: > { %p643_p0 = scmp.ge.s32.totalorder %s775_s23, 2  ;;  %s526_s12 = sand.u32 1, %s755_s18  }
 0x1e3   : > { %s527_s14 = scalar_lea.sflag [#allocation3], %s526_s12 }
 0x1e4   : > { %p640_p1 = pnand %p643_p0, %p858_p8 }
 0x1e6   : > { %p641_p2 = pneg %p640_p1 }
 0x1e8   : > { %750 = dma.done.wait (%p641_p2), %s527_s14, 512  }
 0x1e9   : > { %752 = vsyncadd (%p641_p2), %s527_s14, 4294966784  ;;  %s18_s23 = sadd.s32 1, %s775_s23   ;;  %s975_s18 = smov %s759_s19 }
 0x1ea   : > { %p15_p3 = scmp.ge.s32.totalorder %s18_s23, 4   ;;  %s976_s19 = smov %s763_s20 }
 0x1eb   : > { %s977_s20 = smov %s864_s6  ;;  %s978_s21 = smov %s771_s22 }
 0x1ec   : > { %s979_s22 = smov %s981_s26  ;;  %17 = sbr.rel (!%p15_p3) target bundleno = 4 (0x4), region = 75 }
 0x1f1   :  { %532 = vsyncpa [#allocation3], 1 }
 0x1f2   :  { %534 = vsyncpa [#allocation3 + $0x1], 1 }

</bundles_post_ra>
